<compile_context>
chip_gen: v5e
topology: v5e:2x2
jax: 0.10.0
libtpu: 0.0.40
codegen_flags: <defaults>
</compile_context>

<pallas_src>
import functools

import jax
import jax.numpy as jnp
from jax.experimental import pallas as pl
from jax.experimental.pallas import tpu as pltpu

_LANES = 128
_MAX_WIDTH = 8192  # widest slab = 64 * 128 lanes


# --------------------------------------------------------------------------- #
# Kernel
# --------------------------------------------------------------------------- #
def _clamp_scale_kernel(x_ref, o_ref, *, scale, do_clamp):
    x = x_ref[...]
    if do_clamp:
        x = jnp.clip(x, 0.0, 1.0)          # common.torch.Clamp()
    if scale != 1.0:                        # static: elided for default scale=1
        x = x * jnp.asarray(scale, x.dtype)
    o_ref[...] = x


# --------------------------------------------------------------------------- #
# Layout / tiling helpers
# --------------------------------------------------------------------------- #
def _device_plan():
    """Per-generation block size, scoped-VMEM limit and core count hint."""
    try:
        kind = jax.devices()[0].device_kind.lower()
    except Exception:
        kind = ""
    if "v7" in kind:
        # 2 TCs, 64 MiB VMEM each: 8 MiB blocks -> 32 MiB double-buffered.
        return {"block_bytes": 8 << 20, "vmem_limit": 40 << 20, "multi_core": True}
    if "v6" in kind:
        return {"block_bytes": 8 << 20, "vmem_limit": 40 << 20, "multi_core": False}
    # v5e and anything unknown.
    return {"block_bytes": 4 << 20, "vmem_limit": 32 << 20, "multi_core": False}


def _exact_width(total):
    """Widest power-of-two multiple of 128 (<= 8192) dividing `total`."""
    w = _MAX_WIDTH
    while w >= _LANES:
        if total % w == 0:
            return w
        w //= 2
    return None


def _cdiv(a, b):
    return (a + b - 1) // b


# --------------------------------------------------------------------------- #
# Forward
# --------------------------------------------------------------------------- #
def classifier_forward(image, *, scale=1.0, clamp=True, donate_input=False):
    """Forward pass of the base Classifier: scale * clamp(image, 0, 1).

    `scale` must be a static Python number (it is baked into the kernel).
    Set `donate_input=True` only if the caller donates `image` (output will
    alias the input buffer, saving the output HBM allocation).
    """
    if isinstance(scale, jax.Array):
        raise TypeError("scale must be a static Python number, not a traced/"
                        "jax.Array value (it is compiled into the kernel).")
    scale = float(scale)
    if not jnp.issubdtype(image.dtype, jnp.floating):
        raise TypeError("Classifier expects a floating-point image (clamping "
                        f"integer dtypes is not meaningful); got {image.dtype}.")

    if not clamp and scale == 1.0:
        return image                        # pure identity, nothing to compute

    orig_shape = image.shape
    dtype = image.dtype
    total = int(image.size)
    itemsize = jnp.dtype(dtype).itemsize
    plan = _device_plan()

    if total == 0 or image.ndim == 0:
        # Degenerate shapes: let XLA handle it.
        out = jnp.clip(image, 0.0, 1.0) if clamp else image
        return out * jnp.asarray(scale, dtype) if scale != 1.0 else out

    # ---- choose a 2D (rows, width) view -------------------------------------
    if total % _LANES == 0:
        # Common case: lane-dense slab, no padding, no extra HBM copy.
        width = _exact_width(total)
        rows = total // width
    else:
        # Ragged case: keep the original last dim as the lane axis with a
        # full-extent block.  No jnp.pad / trailing slice (each a full HBM
        # roundtrip); stores may be partially masked but this path is rare.
        width = int(orig_shape[-1])
        rows = total // width
        if width * itemsize > plan["block_bytes"]:
            # Pathological: huge non-128-aligned last dim.  XLA's fused
            # elementwise is already at the HBM roofline here.
            out = jnp.clip(image, 0.0, 1.0) if clamp else image
            return out * jnp.asarray(scale, dtype) if scale != 1.0 else out

    x2d = image.reshape(rows, width)

    # ---- block sizing --------------------------------------------------------
    sublane_mult = max(8, 32 // itemsize)   # 8 f32, 16 bf16, 32 int8/fp8
    target_rows = max(sublane_mult, plan["block_bytes"] // (width * itemsize))
    row_block = max(sublane_mult, (target_rows // sublane_mult) * sublane_mult)
    if row_block >= rows:
        row_block = rows                    # single full-extent block
    grid_steps = _cdiv(rows, row_block)

    # v7x has 2 TensorCores: never collapse to a single grid step for
    # medium/large inputs so the "parallel" axis can be sharded across cores.
    # TODO(synk): if dimension_semantics does not shard across v7x cores,
    # switch to an explicit pltpu.CORE_PARALLEL leading axis / pl.core_map.
    if (plan["multi_core"] and grid_steps == 1
            and rows >= 2 * sublane_mult
            and total * itemsize >= (1 << 20)):
        row_block = _cdiv(_cdiv(rows, 2), sublane_mult) * sublane_mult
        grid_steps = _cdiv(rows, row_block)

    kernel = functools.partial(_clamp_scale_kernel, scale=scale, do_clamp=clamp)

    out2d = pl.pallas_call(
        kernel,
        out_shape=jax.ShapeDtypeStruct((rows, width), dtype),
        grid_spec=pltpu.PrefetchScalarGridSpec(
            num_scalar_prefetch=0,
            grid=(grid_steps,),
            in_specs=[pl.BlockSpec((row_block, width), lambda i: (i, 0))],
            out_specs=pl.BlockSpec((row_block, width), lambda i: (i, 0)),
        ),
        compiler_params=pltpu.CompilerParams(
            dimension_semantics=("parallel",),
            vmem_limit_bytes=plan["vmem_limit"],
        ),
        cost_estimate=pl.CostEstimate(
            flops=rows * width,
            transcendentals=0,
            bytes_accessed=2 * rows * width * itemsize,
        ),
        input_output_aliases=({0: 0} if donate_input else {}),
    )(x2d)

    return out2d.reshape(orig_shape)


def classifier_forward_ref(image, *, scale=1.0, clamp=True):
    """Pure-JAX reference of the PyTorch forward."""
    out = jnp.clip(image, 0.0, 1.0) if clamp else image
    return scale * out


# --------------------------------------------------------------------------- #
# Self-test
# --------------------------------------------------------------------------- #
if __name__ == "__main__":
    # Small shapes consistent with the module: resolution (C,H,W)=(4,16,16),
    # batch=2; N_class=10 is unused by the base forward.
    key = jax.random.PRNGKey(0)
    k0, k1 = jax.random.split(key)
    B, C, H, W = 2, 4, 16, 16
    # Values outside [0, 1] so the clamp actually does something.
    x = jax.random.normal(k0, (B, C, H, W), dtype=jnp.float32) * 1.5 + 0.5

    # 1) Default Classifier kwargs: clamp=True, scale=1 (multiply elided).
    out = jax.block_until_ready(classifier_forward(x, scale=1.0, clamp=True))
    ref = classifier_forward_ref(x, scale=1.0, clamp=True)
    assert out.shape == (B, C, H, W)
    assert jnp.allclose(out, ref, atol=1e-6, rtol=1e-6), "mismatch (scale=1)"

    # 2) Non-unit scale path exercises the in-kernel multiply.
    out2 = jax.block_until_ready(classifier_forward(x, scale=2.5, clamp=True))
    ref2 = classifier_forward_ref(x, scale=2.5, clamp=True)
    assert jnp.allclose(out2, ref2, atol=1e-6, rtol=1e-6), "mismatch (scale=2.5)"

    # 3) Ragged element count (not a multiple of 128) exercises the
    #    last-dim-as-lane-axis path (no pad / slice copies).
    y = jax.random.normal(k1, (2, 3, 17, 19), dtype=jnp.float32) * 1.5 + 0.5
    out3 = jax.block_until_ready(classifier_forward(y, scale=1.0, clamp=True))
    ref3 = classifier_forward_ref(y, scale=1.0, clamp=True)
    assert jnp.allclose(out3, ref3, atol=1e-6, rtol=1e-6), "mismatch (ragged)"

    # 4) bfloat16 path (16-row sublane packing).
    xb = x.astype(jnp.bfloat16)
    outb = jax.block_until_ready(classifier_forward(xb, scale=1.0, clamp=True))
    refb = classifier_forward_ref(xb, scale=1.0, clamp=True)
    assert outb.dtype == jnp.bfloat16
    assert jnp.allclose(outb.astype(jnp.float32), refb.astype(jnp.float32),
                        atol=1e-2, rtol=1e-2), "mismatch (bf16)"

    # 5) clamp=False with non-unit scale (scale-only path).
    out5 = jax.block_until_ready(classifier_forward(x, scale=3.0, clamp=False))
    ref5 = classifier_forward_ref(x, scale=3.0, clamp=False)
    assert jnp.allclose(out5, ref5, atol=1e-6, rtol=1e-6), "mismatch (no clamp)"

    print("KERNEL_OK")
</pallas_src>

<mosaic_0001>
module attributes {stable_mosaic.version = 11 : i64} {
  func.func @_clamp_scale_kernel(%arg0: i32, %arg1: memref<1x2048xf32, #tpu.memory_space<vmem>>, %arg2: memref<1x2048xf32, #tpu.memory_space<vmem>>) attributes {dimension_semantics = [#tpu.dimension_semantics<parallel>], iteration_bounds = array<i64: 1>, scalar_prefetch = 0 : i64, scratch_operands = 0 : i64, tpu.core_type = #tpu.core_type<tc>, window_params = [{transform_indices = @transform_0, window_bounds = array<i64: 1, 2048>}, {transform_indices = @transform_1, window_bounds = array<i64: 1, 2048>}]} {
    %c0 = arith.constant 0 : index
    %c0_0 = arith.constant 0 : index
    %0 = vector.load %arg1[%c0, %c0_0] : memref<1x2048xf32, #tpu.memory_space<vmem>>, vector<1x2048xf32>
    %cst = arith.constant 0.000000e+00 : f32
    %cst_1 = arith.constant 1.000000e+00 : f32
    %1 = vector.broadcast %cst : f32 to vector<1x2048xf32>
    %2 = arith.maximumf %1, %0 : vector<1x2048xf32>
    %3 = vector.broadcast %cst_1 : f32 to vector<1x2048xf32>
    %4 = arith.minimumf %3, %2 : vector<1x2048xf32>
    %c0_2 = arith.constant 0 : index
    %c0_3 = arith.constant 0 : index
    %5 = vector.load %arg2[%c0_2, %c0_3] : memref<1x2048xf32, #tpu.memory_space<vmem>>, vector<1x2048xf32>
    tpu.vector_store %arg2[%c0_2, %c0_3], %4 {strides = array<i32>} : memref<1x2048xf32, #tpu.memory_space<vmem>>, vector<1x2048xf32>,
    return
  }
  func.func @transform_0(%arg0: i32) -> (i32, i32) {
    %c0_i32 = arith.constant 0 : i32
    %c0_i32_0 = arith.constant 0 : i32
    return %arg0, %c0_i32 : i32, i32
  }
  func.func @transform_1(%arg0: i32) -> (i32, i32) {
    %c0_i32 = arith.constant 0 : i32
    %c0_i32_0 = arith.constant 0 : i32
    return %arg0, %c0_i32 : i32, i32
  }
}

</mosaic_0001>

<bundles_post_ra>
// kernel: tpu_custom_call.1
= control target key start
LH: loop header
LB: loop body
LE: loop exit
PB: predicated region body
PF: predicated region fallthrough
CT: control target
= control target key end

     0   :  { %6 = vsyncpa [#allocation3], 0  ;;  %s120_s0 = inlined_call_operand.hbm [shape: f32[1,2048], index: 0, kind: input, shape index: {}]   ;;  %s121_s1 = inlined_call_operand.hbm [shape: f32[1,2048], index: 1, kind: output, shape index: {}]  }
   0x1   :  { %7 = vsyncpa [#allocation4], 0  ;;  %s13_s8 = sshll.u32 %s120_s0, 4  ;;  %s102_s9 = smov [#allocation2]   ;;  %s14_s8 = int_to_ptr.hbm [resolvable:$true] %s13_s8 }
   0x2   :  { %s15_s10 = sshll.u32 %s102_s9, 4  ;;  %s16_s10 = int_to_ptr.vmem [resolvable:$true] %s15_s10 }
   0x3   :  { %18 = dma.hbm_to_vmem [thread:$0]  %s14_s8, 256, %s16_s10, [#allocation3]  }
   0x4   :  { %98 = dma.done.wait [#allocation3], 256  }
   0x5   :  { %99 = vsyncadd [#allocation3], 4294967040  ;;  %v23_v0 = vld [vmem:[#allocation2] sm:$0xff]  ;;  %v24_v1 = vld [vmem:[#allocation2 + $0x8] sm:$0xff]  ;;  %s103_s11 = smov [#allocation5]   ;;  %s38_s15 = sshll.u32 %s121_s1, 4  ;;  %s39_s15 = int_to_ptr.hbm [resolvable:$true] %s38_s15 }
   0x6   :  { %v25_v2 = vmax.f32 %v23_v0, 0.0  ;;  %v26_v3 = vmax.f32 %v24_v1, 0.0  ;;  %s36_s12 = sshll.u32 %s103_s11, 4  ;;  %s37_s12 = int_to_ptr.vmem [resolvable:$true] %s36_s12 }
   0x8   :  { %v27_v4 = vmin.f32 %v25_v2, 1.0  ;;  %v28_v5 = vmin.f32 %v26_v3, 1.0 }
   0xa   :  { %29 = vst [vmem:[#allocation5] sm:$0xff] %v27_v4 }
   0xb   :  { %30 = vst [vmem:[#allocation5 + $0x8] sm:$0xff] %v28_v5 }
   0xc   :  { %41 = dma.vmem_to_hbm [thread:$0]  %s37_s12, 256, %s39_s15, [#allocation4]  }
   0xd   :  { %100 = dma.done.wait [#allocation4], 256  }
   0xe   :  { %101 = vsyncadd [#allocation4], 4294967040 }
   0xf   :  { %46 = vsyncpa [#allocation3], 1 }
  0x10   :  { %47 = vsyncpa [#allocation4], 1 }

</bundles_post_ra>
